<compile_context>
chip_gen: v7x
topology: tpu7x:2x2x1
jax: 0.10.0
libtpu: 0.0.40
codegen_flags: <defaults>
</compile_context>

<pallas_src>
import jax
import jax.numpy as jnp
from jax import lax
from jax.experimental import pallas as pl
from jax.experimental.pallas import tpu as pltpu

# Scoped-VMEM budget: safe on v7x (64 MiB physical per TensorCore) and far below the
# 128 MiB of v5e/v6e.
_VMEM_LIMIT_BYTES = 44 * 1024 * 1024


# ---------------------------------------------------------------------------
# Fast path (scale == 0): uniform attention == mean over positions.
# Data layout: (B, C, S) with S = H*W on the lane dim (NCHW-native, no transposes).
# ---------------------------------------------------------------------------
def _uniform_attention_kernel(x_ref, w_ref, b_ref, o_ref):
    # x_ref: (bt, C, S) f32 | w_ref: (C, C) = Wv@Wn in compute dtype | b_ref: (1, C) f32.
    cdt = w_ref.dtype
    xm = jnp.mean(x_ref[...], axis=-1)                               # (bt, C) lane reduce
    h = jnp.dot(xm.astype(cdt), w_ref[...],
                preferred_element_type=jnp.float32) + b_ref[...]     # (bt, C)
    o_ref[...] = (x_ref[...] + h[:, :, None]).astype(o_ref.dtype)    # lane broadcast + residual


def _residual_broadcast_kernel(x_ref, h_ref, o_ref):
    # x_ref: (1, C, ts) f32 | h_ref: (1, C, 1) f32 -> broadcast add along lane (position) dim.
    o_ref[...] = (x_ref[...] + h_ref[...]).astype(o_ref.dtype)


# ---------------------------------------------------------------------------
# General path (scale != 0): query-tiled softmax attention in (B, S, C).
# ---------------------------------------------------------------------------
def _general_attention_kernel(x_ref, wqkv_ref, bqkv_ref, bfin_ref, o_ref,
                              q_scr, k_scr, v_scr):
    c = o_ref.shape[-1]
    tq = o_ref.shape[0]
    cdt = wqkv_ref.dtype
    qi = pl.program_id(1)

    # Fused Q/K/V' projection hoisted out of the query-tile loop: one (S,C)@(C,3C) MXU
    # matmul per batch row, stored in persistent VMEM scratch.  (scale folded into Wq/bq,
    # Wn folded into Wv, bv carried in the folded output bias.)
    @pl.when(qi == 0)
    def _():
        xs = x_ref[...].astype(cdt)                                        # (S, C)
        qkv = jnp.dot(xs, wqkv_ref[...],
                      preferred_element_type=jnp.float32) + bqkv_ref[...]  # (S, 3C) f32
        q_scr[...] = qkv[:, :c].astype(cdt)
        k_scr[...] = qkv[:, c:2 * c].astype(cdt)
        v_scr[...] = qkv[:, 2 * c:].astype(cdt)

    row0 = pl.multiple_of(qi * tq, tq)
    q = q_scr[pl.ds(row0, tq), :]                                          # (tq, C)

    # logits[s, t] = sum_c q[s, c] * k[t, c]  -- contract last dims, no explicit k.T.
    logits = lax.dot_general(q, k_scr[...], (((1,), (1,)), ((), ())),
                             preferred_element_type=jnp.float32)           # (tq, S)

    # Full-key softmax per query row (keys are never tiled -> no online softmax needed).
    m = jnp.max(logits, axis=-1, keepdims=True)
    p = jnp.exp(logits - m)
    p = p * pl.reciprocal(jnp.sum(p, axis=-1, keepdims=True), approx=True)

    h = jnp.dot(p.astype(cdt), v_scr[...],
                preferred_element_type=jnp.float32) + bfin_ref[...]        # (tq, C)
    o_ref[...] = (x_ref[pl.ds(row0, tq), :] + h).astype(o_ref.dtype)       # residual rows


# ---------------------------------------------------------------------------
# Tiling heuristics
# ---------------------------------------------------------------------------
def _pick_block_b(B, per_elem_bytes, cap_bytes):
    """Largest bt dividing B with bt*per_elem <= cap, keeping the grid >= 2 when B >= 2."""
    best = 1
    for cand in range(1, B + 1):
        if B % cand:
            continue
        if B >= 2 and (B // cand) < 2:
            continue
        if cand * per_elem_bytes > cap_bytes:
            continue
        best = cand
    return best


def _pick_s_tile(C, S, itemsize, cap_bytes=2 << 20, max_ts=None):
    """Largest multiple-of-128 divisor of S whose (C, ts) block stays under cap."""
    if S % 128 != 0:
        return S
    limit = S if max_ts is None else max(128, min(S, max_ts))
    for k in range(limit // 128, 0, -1):
        ts = 128 * k
        if S % ts == 0 and C * ts * itemsize <= cap_bytes:
            return ts
    return S


def _pick_query_tile(S):
    """VMEM-aware query tile: keep the live f32 (tq, S) logits + p around <= 8 MiB."""
    if S <= 1024:
        return S
    cap = max(64, (8 << 20) // (8 * S))
    for cand in (1024, 512, 256, 128, 64, 32, 16, 8):
        if cand <= cap and S % cand == 0:
            return cand
    return S


# ---------------------------------------------------------------------------
# Path drivers
# ---------------------------------------------------------------------------
def _attention_fast_bcs(x_bcs, w_fold, b_fold, *, compute_dtype, max_fused_block_bytes):
    B, C, S = x_bcs.shape
    itemsize = x_bcs.dtype.itemsize
    per_elem = C * S * itemsize
    # For B == 1 a fused call is a single un-pipelined grid step (one v7x TensorCore idle);
    # prefer the split variant when S tiles lane-densely into >= 2 pieces.
    prefer_split = (B == 1 and S % 128 == 0 and S >= 256)

    if per_elem <= max_fused_block_bytes and not prefer_split:
        bt = _pick_block_b(B, per_elem, max_fused_block_bytes)
        return pl.pallas_call(
            _uniform_attention_kernel,
            out_shape=jax.ShapeDtypeStruct((B, C, S), x_bcs.dtype),
            grid_spec=pltpu.PrefetchScalarGridSpec(
                num_scalar_prefetch=0,
                grid=(B // bt,),
                in_specs=[
                    pl.BlockSpec((bt, C, S), lambda b: (b, 0, 0)),
                    pl.BlockSpec((C, C), lambda b: (0, 0)),
                    pl.BlockSpec((1, C), lambda b: (0, 0)),
                ],
                out_specs=pl.BlockSpec((bt, C, S), lambda b: (b, 0, 0)),
            ),
            compiler_params=pltpu.CompilerParams(
                dimension_semantics=("parallel",),
                vmem_limit_bytes=_VMEM_LIMIT_BYTES),
        )(x_bcs, w_fold.astype(compute_dtype), b_fold)

    # Split variant (huge S or B == 1): the tiny mean + (C,C) matmul stay in XLA (mem-bound
    # reduce / negligible FLOPs); the bulk residual broadcast-add runs as a lane-dense
    # Pallas kernel tiled over (B, S) with both axes parallel.
    xm = jnp.mean(x_bcs, axis=-1)                          # (B, C) f32
    h = xm @ w_fold + b_fold                               # (B, C) f32 (tiny)
    h3 = h[:, :, None].astype(jnp.float32)                 # (B, C, 1)
    ts = _pick_s_tile(C, S, itemsize, max_ts=(S // 2 if B == 1 else None))
    return pl.pallas_call(
        _residual_broadcast_kernel,
        out_shape=jax.ShapeDtypeStruct((B, C, S), x_bcs.dtype),
        grid_spec=pltpu.PrefetchScalarGridSpec(
            num_scalar_prefetch=0,
            grid=(B, S // ts),
            in_specs=[
                pl.BlockSpec((1, C, ts), lambda b, s: (b, 0, s)),
                pl.BlockSpec((1, C, 1), lambda b, s: (b, 0, 0)),
            ],
            out_specs=pl.BlockSpec((1, C, ts), lambda b, s: (b, 0, s)),
        ),
        compiler_params=pltpu.CompilerParams(
            dimension_semantics=("parallel", "parallel"),
            vmem_limit_bytes=_VMEM_LIMIT_BYTES),
    )(x_bcs, h3)


def _attention_general_bsc(x_bsc, wq, bq, wk, bk, wv, bv, wn, bn, *, scale, compute_dtype):
    B, S, C = x_bsc.shape
    f32 = jnp.float32
    tq = _pick_query_tile(S)
    n_q = S // tq

    # Exact weight folding (done once, outside the kernel):
    #   q' = x @ (Wq*scale) + bq*scale     (attention scale folded into Q)
    #   v' = x @ (Wv @ Wn)                 (final Nin folded into V, no bias)
    #   out bias = bv @ Wn + bn            (softmax rows sum to ~1)
    wq_s = wq.astype(f32) * scale
    wvn = wv.astype(f32) @ wn.astype(f32)
    wqkv = jnp.concatenate([wq_s, wk.astype(f32), wvn], axis=1).astype(compute_dtype)  # (C,3C)
    bqkv = jnp.concatenate([bq.astype(f32) * scale, bk.astype(f32),
                            jnp.zeros((C,), f32)]).reshape(1, 3 * C)
    bfin = (bv.astype(f32) @ wn.astype(f32) + bn.astype(f32)).reshape(1, C)

    return pl.pallas_call(
        _general_attention_kernel,
        out_shape=jax.ShapeDtypeStruct((B, S, C), x_bsc.dtype),
        grid_spec=pltpu.PrefetchScalarGridSpec(
            num_scalar_prefetch=0,
            grid=(B, n_q),
            in_specs=[
                # Full-S row block; block index is qi-invariant so it is DMA'd once per b
                # and the query/residual rows are sliced from it (no duplicated x stream).
                pl.BlockSpec((None, S, C), lambda b, qi: (b, 0, 0)),
                pl.BlockSpec((C, 3 * C), lambda b, qi: (0, 0)),
                pl.BlockSpec((1, 3 * C), lambda b, qi: (0, 0)),
                pl.BlockSpec((1, C), lambda b, qi: (0, 0)),
            ],
            out_specs=pl.BlockSpec((None, tq, C), lambda b, qi: (b, qi, 0)),
            scratch_shapes=[pltpu.VMEM((S, C), compute_dtype)] * 3,
        ),
        compiler_params=pltpu.CompilerParams(
            # qi must be "arbitrary": the projection scratch is carried across query tiles.
            dimension_semantics=("parallel", "arbitrary"),
            vmem_limit_bytes=_VMEM_LIMIT_BYTES),
    )(x_bsc, wqkv, bqkv, bfin)


# ---------------------------------------------------------------------------
# Public wrapper (NCHW, matches the PyTorch module) + pure-JAX reference
# ---------------------------------------------------------------------------
def attention_block(x_nchw, wq, bq, wk, bk, wv, bv, wn, bn, *,
                    compute_dtype=jnp.bfloat16, scale_override=None,
                    max_fused_block_bytes=6 << 20):
    """AttentionBlock.forward.  `scale_override` only exists to exercise the general path;
    by default the PyTorch `int(C ** (-0.5))` scale (== 0 for every valid C) is reproduced."""
    B, C, H, W = x_nchw.shape
    S = H * W
    scale = float(int(C ** (-0.5))) if scale_override is None else float(scale_override)
    f32 = jnp.float32

    if scale == 0.0:
        # NCHW-native: (B, C, H, W) -> (B, C, S) is a free reshape (no transpose).
        x_bcs = x_nchw.reshape(B, C, S)
        w_fold = wv.astype(f32) @ wn.astype(f32)                                   # Wv @ Wn
        b_fold = (bv.astype(f32) @ wn.astype(f32) + bn.astype(f32)).reshape(1, C)  # bv@Wn + bn
        out = _attention_fast_bcs(x_bcs, w_fold, b_fold,
                                  compute_dtype=compute_dtype,
                                  max_fused_block_bytes=max_fused_block_bytes)
        return out.reshape(B, C, H, W)

    # General softmax-attention path works position-major (B, S, C); the two transposes are
    # only paid on this (never-taken-by-the-real-module) branch.
    x_bsc = jnp.transpose(x_nchw, (0, 2, 3, 1)).reshape(B, S, C)
    out = _attention_general_bsc(x_bsc, wq, bq, wk, bk, wv, bv, wn, bn,
                                 scale=scale, compute_dtype=compute_dtype)
    return jnp.transpose(out.reshape(B, H, W, C), (0, 3, 1, 2))


def attention_block_reference(x_nchw, wq, bq, wk, bk, wv, bv, wn, bn, scale=None):
    """Pure-JAX reference mirroring the PyTorch forward (dead group_norm omitted)."""
    B, C, H, W = x_nchw.shape
    if scale is None:
        scale = int(C ** (-0.5))

    def nin(x, w, b):
        return jnp.einsum('bchw,co->bohw', x, w) + b[None, :, None, None]

    q = nin(x_nchw, wq, bq)
    k = nin(x_nchw, wk, bk)
    v = nin(x_nchw, wv, bv)
    w = jnp.einsum('bchw,bcHW->bhwHW', q, k) * scale
    w = jax.nn.softmax(w.reshape(B, H, W, H * W), axis=-1).reshape(B, H, W, H, W)
    h = jnp.einsum('bhwHW,bcHW->bchw', w, v)
    h = nin(h, wn, bn)
    return x_nchw + h


if __name__ == "__main__":
    B, C, H, W = 2, 32, 8, 8   # C=32 so the (dead) group_norm(.., 32) in PyTorch is well-defined

    key = jax.random.PRNGKey(0)
    kx, kq, kk, kv, kn, kbq, kbk, kbv, kbn = jax.random.split(key, 9)

    x = jax.random.normal(kx, (B, C, H, W), dtype=jnp.float32)
    wq = 0.1 * jax.random.normal(kq, (C, C), dtype=jnp.float32)
    wk = 0.1 * jax.random.normal(kk, (C, C), dtype=jnp.float32)
    wv = 0.1 * jax.random.normal(kv, (C, C), dtype=jnp.float32)
    wn = 0.1 * jax.random.normal(kn, (C, C), dtype=jnp.float32)
    bq = 0.1 * jax.random.normal(kbq, (C,), dtype=jnp.float32)
    bk = 0.1 * jax.random.normal(kbk, (C,), dtype=jnp.float32)
    bv = 0.1 * jax.random.normal(kbv, (C,), dtype=jnp.float32)
    bn = 0.1 * jax.random.normal(kbn, (C,), dtype=jnp.float32)

    ref = attention_block_reference(x, wq, bq, wk, bk, wv, bv, wn, bn)

    # 1) Module-faithful path (scale == int(C**-0.5) == 0), default bf16 operands, fused kernel.
    out = jax.block_until_ready(attention_block(x, wq, bq, wk, bk, wv, bv, wn, bn))
    assert out.shape == x.shape
    assert jnp.allclose(out, ref, atol=2e-2, rtol=2e-2), "mismatch (fast path, bf16)"

    # 2) f32 operands for a tight numerical check of the fused fast kernel.
    out_f32 = jax.block_until_ready(
        attention_block(x, wq, bq, wk, bk, wv, bv, wn, bn, compute_dtype=jnp.float32))
    assert jnp.allclose(out_f32, ref, atol=1e-4, rtol=1e-4), "mismatch (fast path, f32)"

    # 3) Split fast path (large-S / B==1 fallback), forced via a zero fused-block budget.
    out_split = jax.block_until_ready(
        attention_block(x, wq, bq, wk, bk, wv, bv, wn, bn,
                        compute_dtype=jnp.float32, max_fused_block_bytes=0))
    assert jnp.allclose(out_split, ref, atol=1e-4, rtol=1e-4), "mismatch (fast path, split)"

    # 4) General softmax-attention path, exercised via an explicit non-zero scale override.
    gscale = float(C) ** -0.5
    ref_gen = attention_block_reference(x, wq, bq, wk, bk, wv, bv, wn, bn, scale=gscale)
    out_gen = jax.block_until_ready(
        attention_block(x, wq, bq, wk, bk, wv, bv, wn, bn, scale_override=gscale))
    assert jnp.allclose(out_gen, ref_gen, atol=5e-2, rtol=5e-2), "mismatch (general path)"

    print("KERNEL_OK")
</pallas_src>

<mosaic_0001>
module attributes {stable_mosaic.version = 11 : i64} {
  func.func @_uniform_attention_kernel(%arg0: i32, %arg1: memref<1x32x64xf32, #tpu.memory_space<vmem>>, %arg2: memref<32x32xbf16, #tpu.memory_space<vmem>>, %arg3: memref<1x32xf32, #tpu.memory_space<vmem>>, %arg4: memref<1x32x64xf32, #tpu.memory_space<vmem>>) attributes {dimension_semantics = [#tpu.dimension_semantics<parallel>], iteration_bounds = array<i64: 2>, scalar_prefetch = 0 : i64, scratch_operands = 0 : i64, tpu.core_type = #tpu.core_type<tc>, window_params = [{transform_indices = @transform_0, window_bounds = array<i64: 1, 32, 64>}, {pipeline_mode = #tpu.pipeline_mode<synchronous>, transform_indices = @transform_1, window_bounds = array<i64: 32, 32>}, {pipeline_mode = #tpu.pipeline_mode<synchronous>, transform_indices = @transform_2, window_bounds = array<i64: 1, 32>}, {transform_indices = @transform_3, window_bounds = array<i64: 1, 32, 64>}]} {
    %c0 = arith.constant 0 : index
    %c0_0 = arith.constant 0 : index
    %c0_1 = arith.constant 0 : index
    %0 = vector.load %arg1[%c0, %c0_0, %c0_1] : memref<1x32x64xf32, #tpu.memory_space<vmem>>, vector<1x32x64xf32>
    %cst = arith.constant dense<0.000000e+00> : vector<1x32xf32>
    %1 = vector.multi_reduction <add>, %0, %cst [2] : vector<1x32x64xf32> to vector<1x32xf32>
    %cst_2 = arith.constant 6.400000e+01 : f32
    %2 = vector.broadcast %cst_2 : f32 to vector<1x32xf32>
    %3 = arith.divf %1, %2 : vector<1x32xf32>
    %4 = arith.truncf %3 : vector<1x32xf32> to vector<1x32xbf16>
    %c0_3 = arith.constant 0 : index
    %c0_4 = arith.constant 0 : index
    %5 = vector.load %arg2[%c0_3, %c0_4] : memref<32x32xbf16, #tpu.memory_space<vmem>>, vector<32x32xbf16>
    %cst_5 = arith.constant dense<0.000000e+00> : vector<1x32xf32>
    %6 = tpu.matmul %4, %5, %cst_5 {dimension_numbers = #tpu.dot_dimension_numbers<[1], [0], [0], [1], [0, 0, 1, 1], [], []>} : vector<1x32xbf16>, vector<32x32xbf16>, vector<1x32xf32> -> vector<1x32xf32>
    %c0_6 = arith.constant 0 : index
    %c0_7 = arith.constant 0 : index
    %7 = vector.load %arg3[%c0_6, %c0_7] : memref<1x32xf32, #tpu.memory_space<vmem>>, vector<1x32xf32>
    %8 = arith.addf %6, %7 : vector<1x32xf32>
    %c0_8 = arith.constant 0 : index
    %c0_9 = arith.constant 0 : index
    %c0_10 = arith.constant 0 : index
    %9 = vector.load %arg1[%c0_8, %c0_9, %c0_10] : memref<1x32x64xf32, #tpu.memory_space<vmem>>, vector<1x32x64xf32>
    %10 = vector.shape_cast %8 : vector<1x32xf32> to vector<1x32x1xf32>
    %11 = vector.broadcast %10 : vector<1x32x1xf32> to vector<1x32x64xf32>
    %12 = arith.addf %9, %11 : vector<1x32x64xf32>
    %c0_11 = arith.constant 0 : index
    %c0_12 = arith.constant 0 : index
    %c0_13 = arith.constant 0 : index
    %13 = vector.load %arg4[%c0_11, %c0_12, %c0_13] : memref<1x32x64xf32, #tpu.memory_space<vmem>>, vector<1x32x64xf32>
    tpu.vector_store %arg4[%c0_11, %c0_12, %c0_13], %12 {strides = array<i32>} : memref<1x32x64xf32, #tpu.memory_space<vmem>>, vector<1x32x64xf32>,
    return
  }
  func.func @transform_0(%arg0: i32) -> (i32, i32, i32) {
    %c0_i32 = arith.constant 0 : i32
    %c0_i32_0 = arith.constant 0 : i32
    %c0_i32_1 = arith.constant 0 : i32
    return %arg0, %c0_i32, %c0_i32_0 : i32, i32, i32
  }
  func.func @transform_1(%arg0: i32) -> (i32, i32) {
    %c0_i32 = arith.constant 0 : i32
    %c0_i32_0 = arith.constant 0 : i32
    %c0_i32_1 = arith.constant 0 : i32
    return %c0_i32, %c0_i32_0 : i32, i32
  }
  func.func @transform_2(%arg0: i32) -> (i32, i32) {
    %c0_i32 = arith.constant 0 : i32
    %c0_i32_0 = arith.constant 0 : i32
    %c0_i32_1 = arith.constant 0 : i32
    return %c0_i32, %c0_i32_0 : i32, i32
  }
  func.func @transform_3(%arg0: i32) -> (i32, i32, i32) {
    %c0_i32 = arith.constant 0 : i32
    %c0_i32_0 = arith.constant 0 : i32
    %c0_i32_1 = arith.constant 0 : i32
    return %arg0, %c0_i32, %c0_i32_0 : i32, i32, i32
  }
}

</mosaic_0001>

<bundles_post_ra>
// kernel: tpu_custom_call.1
= control target key start
LH: loop header
LB: loop body
LE: loop exit
PB: predicated region body
PF: predicated region fallthrough
CT: control target
= control target key end

     0   :  { %8 = vsyncpa [#allocation3], 0  ;;  %s940_s0 = inlined_call_operand.hbm [shape: f32[2,32,64], index: 0, kind: input, shape index: {}]   ;;  %s941_s1 = inlined_call_operand.hbm [shape: bf16[32,32], index: 1, kind: input, shape index: {}]   ;;  %s942_s2 = inlined_call_operand.vmem [shape: f32[1,32], index: 2, kind: input, shape index: {}]   ;;  %s943_s3 = inlined_call_operand.hbm [shape: f32[2,32,64], index: 3, kind: output, shape index: {}]  }
   0x1   :  { %10 = vsyncpa [#allocation3 + $0x1], 0 }
   0x2   :  { %11 = vsyncpa [#allocation6], 0 }
   0x3   :  { %12 = vsyncpa [#allocation4], 0 }
   0x4   :  { %14 = vsyncpa [#allocation4 + $0x1], 0  ;;  %s708_s12 = smov 0   ;;  %s710_s13 = smov 0  }
   0x5   :  { %s712_s14 = smov 0   ;;  %s714_s15 = smov 0  }
   0x6 LB: > { %s729_s16 = sadd.s32 4294967295, %s675_s15   ;;  %s448_s17 = sadd.s32 4294967294, %s675_s15   ;;  %s675_s15 = sphi %s714_s15, %s963_s15   ;;  %s671_s14 = sphi %s712_s14, %s962_s14   ;;  %s667_s13 = sphi %s710_s13, %s961_s13   ;;  %s663_s12 = sphi %s708_s12, %s960_s12  }
   0x7   : > { %p40_p0 = scmp.ne.s32.totalorder %s667_s13, %s663_s12  ;;  %p944_p1 = scmp.eq.s32.totalorder %s729_s16, 0 }
   0x8   : > { %p112_p3 = scmp.eq.s32.totalorder %s448_s17, 1  ;;  %p449_p5 = scmp.ge.s32.totalorder %s675_s15, 1 }
   0x9   : > { %p738_p4 = por %p944_p1, %p40_p0  ;;  %p119_p7 = scmp.lt.s32.totalorder %s675_s15, 3 }
   0xa   : > { %p743_p6 = por %p112_p3, %p40_p0  ;;  %s677_s21 = smov [#allocation5]  }
   0xb   : > { %s947_s18 = scalar_select %p738_p4, 1, 0 }
   0xc   : > { %s948_s19 = scalar_select %p743_p6, 1, 0 }
   0xd   : > { %p748_p8 = pnand %p449_p5, %p119_p7  ;;  %s131_s22 = sshll.u32 %s677_s21, 4  ;;  %s752_s22 = int_to_ptr.vmem [resolvable:$true] %s131_s22 }
   0xe   : > { %s764_s24 = sadd.s32 1, %s675_s15   ;;  %s27_s25 = sadd.s32 1, %s671_s14 }
   0xf   : > { %s949_s20 = scalar_select %p748_p8, 1, 0 }
  0x10   : > { %p488_p9 = pneg %p748_p8  ;;  %s24_s26 = ssub.s32 %s675_s15, %s764_s24 }
  0x11   : > { %s547_s29 = scalar_lea.hbm %s941_s1, 256 }
  0x12   : > { %p759_p11 = pnand %p488_p9, %p944_p1  ;;  %p548_p12 = scmp.ne.s32.totalorder %s941_s1, %s547_s29 }
  0x13   : > { %p554_p5 = scmp.lt.u32.totalorder %s547_s29, %s941_s1 }
  0x14   : > { %p549_p13 = pneg %p759_p11 }
  0x16   : > { %p550_p0 = pnand %p549_p13, %p548_p12 }
  0x18   : > { %p551_p3 = pneg %p550_p0 }
  0x1a   : > { %p556_p7 = pnand %p554_p5, %p551_p3 }
  0x1c   : > { %559 = shalt.err (!%p556_p7)
}
  0x1d   : > { %s560_s7 = scalar_lea.vmem %s752_s22, 256  ;;  %p568_p2 = scmp.lt.s32.totalorder %s752_s22, %s752_s22 }
  0x1e   : > { %p561_p9 = scmp.ne.s32.totalorder %s752_s22, %s560_s7  ;;  %p569_p6 = scmp.lt.s32.totalorder %s560_s7, %s560_s7 }
  0x20   : > { %p563_p10 = pnand %p561_p9, %p549_p13  ;;  %p570_p4 = por %p569_p6, %p568_p2 }
  0x22   : > { %p564_p1 = pneg %p563_p10 }
  0x24   : > { %p571_p8 = pnand %p570_p4, %p564_p1 }
  0x26   : > { %574 = shalt.err (!%p571_p8)
}
  0x27   : > { %s678_s8 = smov 64   ;;  %s679_s9 = smov 4  }
  0x28   : > { %491 = dma.hbm_to_vmem [thread:$0]  (!%p759_p11), %s941_s1, 256, %s752_s22, [#allocation6], %s678_s8, %s678_s8, %s679_s9  }
  0x29   : > { %p25_p2 = scmp.eq.s32.totalorder %s24_s26, 0  ;;  %p34_p1 = scmp.ne.s32.totalorder %s671_s14, %s667_s13 }
  0x2a   : > { %p35_p4 = scmp.eq.s32.totalorder %s675_s15, 0  ;;  %p501_p6 = scmp.lt.s32.totalorder %s675_s15, 2 }
  0x2b   : > { %s795_s17 = scalar_select %p25_p2, %s671_s14, %s27_s25  }
  0x2c   : > { %p36_p8 = por %p35_p4, %p34_p1  ;;  %p951_p10 = scmp.eq.s32.totalorder %s729_s16, 1 }
  0x2d   : > { %s148_s27 = sand.u32 1, %s671_s14   ;;  %s467_s28 = sshll.u32 %s675_s15, 9 }
  0x2e   : > { %p799_p12 = por %p951_p10, %p34_p1  ;;  %s452_s29 = sshll.u32 %s148_s27, 5 }
  0x2f   : > { %s808_s4 = scalar_lea.hbm %s940_s0, %s467_s28  ;;  %s152_s22 = scalar_lea.vmem [#allocation2], %s452_s29 }
  0x30   : > { %s159_s25 = sshll.u32 %s152_s22, 4  ;;  %p810_p11 = pnand %p501_p6, %p36_p8  ;;  %s814_s25 = int_to_ptr.vmem [resolvable:$true] %s159_s25 }
  0x31   : > { %s816_s5 = scalar_lea.sflag [#allocation3], %s148_s27  ;;  %s575_s6 = scalar_lea.hbm %s808_s4, 512 }
  0x32   : > { %p576_p13 = scmp.ne.s32.totalorder %s808_s4, %s575_s6  ;;  %p577_p0 = pneg %p810_p11 }
  0x33   : > { %s580_s9 = scalar_lea.hbm %s940_s0, 1024  ;;  %p581_p7 = scmp.lt.u32.totalorder %s808_s4, %s940_s0 }
  0x34   : > { %p578_p3 = pnand %p577_p0, %p576_p13  ;;  %p582_p9 = scmp.lt.u32.totalorder %s580_s9, %s575_s6 }
  0x35   : > { %p584_p1 = scmp.lt.u32.totalorder %s575_s6, %s808_s4 }
  0x36   : > { %p579_p5 = pneg %p578_p3  ;;  %p583_p2 = por %p582_p9, %p581_p7 }
  0x38   : > { %p585_p4 = por %p584_p1, %p583_p2 }
  0x3a   : > { %p586_p6 = pnand %p585_p4, %p579_p5 }
  0x3c   : > { %589 = shalt.err (!%p586_p6)
}
  0x3d   : > { %s590_s27 = scalar_lea.vmem %s814_s25, 512  ;;  %s680_s28 = smov [#allocation2]  }
  0x3e   : > { %p591_p8 = scmp.ne.s32.totalorder %s814_s25, %s590_s27  ;;  %s595_s29 = sshll.u32 %s680_s28, 4  ;;  %s596_s29 = int_to_ptr.vmem [resolvable:$false] %s595_s29 }
  0x3f   : > { %s597_s23 = scalar_lea.vmem %s596_s29, 1024  ;;  %p598_p3 = scmp.lt.s32.totalorder %s814_s25, %s596_s29 }
  0x40   : > { %p593_p10 = pnand %p591_p8, %p577_p0  ;;  %p599_p7 = scmp.lt.s32.totalorder %s597_s23, %s590_s27 }
  0x42   : > { %p594_p13 = pneg %p593_p10  ;;  %p600_p9 = por %p599_p7, %p598_p3 }
  0x44   : > { %p601_p2 = pnand %p600_p9, %p594_p13 }
  0x46   : > { %604 = shalt.err (!%p601_p2)
}
  0x47   : > { %s681_s30 = smov 128   ;;  %s682_s22 = smov 8  }
  0x48   : > { %495 = dma.hbm_to_vmem [thread:$0]  (!%p810_p11), %s808_s4, 512, %s814_s25, %s816_s5, %s681_s30, %s681_s30, %s682_s22  }
  0x49   : > { %p954_p0 = scmp.ne.s32.totalorder %s949_s20, 0 }
  0x4a   : > { %s847_s6 = sand.u32 (!%p954_p0), 1, %s667_s13   ;;  %p955_p5 = scmp.ne.s32.totalorder (!%p954_p0), %s947_s18, 0 }
  0x4b   : > { %171 = sbr.rel (%p954_p0) target bundleno = 603 (0x25b), region = 32  ;;  %s456_s7 = sshll.u32 (!%p954_p0), %s847_s6, 5 }
  0x4c   : > { %s174_s8 = scalar_lea.sflag (!%p954_p0), [#allocation3], %s847_s6  ;;  %s177_s9 = scalar_lea.vmem (!%p954_p0), [#allocation2], %s456_s7 }
  0x52   : > { %650 = dma.done.wait (%p955_p5), %s174_s8, 512  }
  0x53   : > { %652 = vsyncadd (%p955_p5), %s174_s8, 4294966784  ;;  %p956_p11 = scmp.eq.s32.totalorder %s729_s16, 0 }
  0x55   : > { %654 = dma.done.wait (%p956_p11), [#allocation6], 256   ;;  %p957_p1 = pmov %p956_p11 }
  0x56   : > { %vm209_vm0 = vcmask 523264   ;;  %v861_v0 = vld [vmem:[%s177_s9 + $0x10] sm:$0xff]  ;;  %v863_v1 = vld [vmem:[%s177_s9] sm:$0xff]  ;;  %v865_v2 = vld [vmem:[%s177_s9 + $0x18] sm:$0xff]  ;;  %v683_v9 = vmov 0.0   ;;  %vm684_vm1 = vmmov 0   ;;  %v240_v11 = vlaneseq }
  0x57   : > { %656 = vsyncadd (%p957_p1), [#allocation6], 4294967040  ;;  %v216_v3 = vsel %vm209_vm0, %v861_v0, 0.0  ;;  %v210_v4 = vsel %vm209_vm0, %v863_v1, 0.0  ;;  %v871_v5 = vld [vmem:[%s177_s9 + $0x8] sm:$0xff]  ;;  %v219_v6 = vsel %vm209_vm0, %v865_v2, 0.0  ;;  %472 = vmatprep.subr.bf16.mxu0 %v683_v9  ;;  %476 = vmatprep.mubr.msk.bf16.mxu0 %vm684_vm1, %v683_v9 }
  0x58   : > { %217 = vadd.xlane.f32.xlu1 %v216_v3  ;;  %211 = vadd.xlane.f32.xlu0 %v210_v4  ;;  %v213_v7 = vsel %vm209_vm0, %v871_v5, 0.0  ;;  %v545_v8 = vld [vmem:[#allocation5] sm:$0xff]   ;;  %v546_v10 = vld [vmem:[#allocation5 + $0x8] sm:$0xff]   ;;  %v241_v12 = vand.u32 127, %v240_v11  ;;  %v243_v15 = vshrl.u32 %v240_v11, 7  ;;  %vm251_vm2 = vcmask 130112  }
  0x59   : > { %473 = vmatpush3.bf16.msra.mxu0 %v545_v8  ;;  %vm258_vm3 = vcmask 195712   ;;  %vm265_vm4 = vcmask 261312   ;;  %vm280_vm5 = vcmask 261120   ;;  %v233_v43 = vld [vmem:[%s942_s2] sm:$0x1]  ;;  %s203_s4 = scalar_lea.vmem [#allocation7], %s456_s7 }
  0x5a   : > { %474 = vmatprep.subr.bf16.mxu0 %v683_v9  ;;  %v253_v16 = vadd.s32 4294967280, %v241_v12  ;;  %v246_v17 = vadd.s32 4294967288, %v241_v12  ;;  %v260_v18 = vadd.s32 4294967272, %v241_v12  ;;  %v244_v27 = vsub.s32 %v241_v12, %v243_v15  ;;  %s365_s25 = sshll.u32 %s203_s4, 4  ;;  %s468_s26 = sshll.u32 %s729_s16, 9  ;;  %s888_s25 = int_to_ptr.vmem [resolvable:$true] %s365_s25 }
  0x5b   : > { %v326_v44 = vsub.s32 0, %v243_v15  ;;  %s894_s11 = scalar_lea.hbm %s943_s3, %s468_s26  ;;  %s352_s27 = scalar_lea.sflag [#allocation4], %s847_s6 }
  0x5c   : > { %220 = vadd.xlane.f32.xlu1 %v219_v6  ;;  %214 = vadd.xlane.f32.xlu0 %v213_v7  ;;  %v256_v25 = vsub.s32 %v253_v16, %v243_v15  ;;  %v249_v28 = vsub.s32 %v246_v17, %v243_v15  ;;  %v263_v30 = vsub.s32 %v260_v18, %v243_v15  ;;  %s605_s28 = scalar_lea.vmem %s888_s25, 512  ;;  %s685_s16 = smov [#allocation7]  }
  0x5d   : > { %475 = vmatpush3.bf16.msra.mxu0 %v546_v10  ;;  %p606_p4 = scmp.ne.s32.totalorder %s888_s25, %s605_s28  ;;  %s609_s29 = sshll.u32 %s685_s16, 4  ;;  %s610_s29 = int_to_ptr.vmem [resolvable:$false] %s609_s29 }
  0x5e   : > { %s611_s23 = scalar_lea.vmem %s610_s29, 1024  ;;  %p612_p10 = scmp.lt.s32.totalorder %s888_s25, %s610_s29 }
  0x5f   : > { %p607_p6 = pnand %p606_p4, %p799_p12  ;;  %p613_p13 = scmp.lt.s32.totalorder %s611_s23, %s605_s28 }
  0x61   : > { %p608_p8 = pneg %p607_p6  ;;  %p614_p3 = por %p613_p13, %p612_p10 }
  0x63   : > { %p615_p7 = pnand %p614_p3, %p608_p8 }
  0xe5   : > { %v218_v13 = vpop.xlane.xlu1 %217  ;;  %v212_v14 = vpop.xlane.xlu0 %211 }
  0xe6   : > { %v225_v21 = vmul.f32 0.015625, %v218_v13  ;;  %v223_v22 = vmul.f32 0.015625, %v212_v14 }
  0xe9   : > { %v221_v19 = vpop.xlane.xlu1 %220  ;;  %v215_v20 = vpop.xlane.xlu0 %214 }
  0xea   : > { %v226_v23 = vmul.f32 0.015625, %v221_v19  ;;  %v224_v24 = vmul.f32 0.015625, %v215_v20 }
  0xec   : > { %v228_v26 = vpack.c.bf16 %v226_v23, %v225_v21  ;;  %v227_v29 = vpack.c.bf16 %v224_v24, %v223_v22 }
  0xee   : > { %v238_v31 = vunpack.c.l.b16 %v228_v26  ;;  %v239_v32 = vunpack.c.h.b16 %v228_v26  ;;  %v236_v33 = vunpack.c.l.b16 %v227_v29  ;;  %v237_v34 = vunpack.c.h.b16 %v227_v29 }
  0xf0   : > { %v257_v35 = vrot.slane %v238_v31, %v256_v25  ;;  %v245_v36 = vrot.slane %v236_v33, %v244_v27  ;;  %v250_v37 = vrot.slane %v237_v34, %v249_v28  ;;  %v264_v38 = vrot.slane %v239_v32, %v263_v30 }
  0xf2   : > { %v252_v39 = vsel %vm251_vm2, %v250_v37, %v245_v36 }
  0xf3   : > { %v259_v40 = vsel %vm258_vm3, %v257_v35, %v252_v39 }
  0xf4   : > { %v266_v41 = vsel %vm265_vm4, %v264_v38, %v259_v40 }
  0xf5   : > { %v267_v42 = vpack.c.b16 %v266_v41, %v266_v41 }
  0xf7   : > { %477 = vmatmul.mubr.msk.bf16.vlgmr.msra.gmra.mrb[0].mxu0 %vm280_vm5, %v267_v42 }
 0x1ca   : > { %v318_v45 = vpop.f32.mrb[0].mxu0 }
 0x1cb   : > { %v319_v46 = vadd.f32 %v318_v45, %v233_v43  ;;  %v478_v47 = vpop.f32.mrb[1].mxu0 }
 0x1cc   : > { %v321_v48 = vpop.f32.mrb[2].mxu0 }
 0x1cd   : > { %v327_v49 = vrot.slane %v319_v46, %v326_v44  ;;  %v479_v50 = vpop.f32.mrb[3].mxu0 }
 0x1cf   : > { %333 = vbcast.lane.b32.xlu1 %v327_v49, 264  ;;  %329 = vbcast.lane.b32.xlu0 %v327_v49, 256 }
 0x1d3   : > { %337 = vbcast.lane.b32.xlu1 %v327_v49, 272 }
 0x1d7   : > { %341 = vbcast.lane.b32.xlu1 %v327_v49, 280 }
 0x241   : > { %v334_v51 = vpop.permute.xlu1 %333  ;;  %v330_v52 = vpop.permute.xlu0 %329 }
 0x242   : > { %v344_v53 = vadd.f32 %v334_v51, %v871_v5  ;;  %v343_v54 = vadd.f32 %v330_v52, %v863_v1 }
 0x244   : > { %348 = vst.msk [vmem:[%s203_s4 + $0x8] sm:$0xff] %vm209_vm0, %v344_v53  ;;  %347 = vst.msk [vmem:[%s203_s4] sm:$0xff] %vm209_vm0, %v343_v54 }
 0x245   : > { %v338_v55 = vpop.permute.xlu1 %337 }
 0x246   : > { %v345_v56 = vadd.f32 %v338_v55, %v861_v0 }
 0x248   : > { %349 = vst.msk [vmem:[%s203_s4 + $0x10] sm:$0xff] %vm209_vm0, %v345_v56 }
 0x249   : > { %v342_v57 = vpop.permute.xlu1 %341 }
 0x24a   : > { %v346_v58 = vadd.f32 %v342_v57, %v865_v2 }
 0x24c   : > { %350 = vst.msk [vmem:[%s203_s4 + $0x18] sm:$0xff] %vm209_vm0, %v346_v58 }
 0x24d   : > { %618 = shalt.err (!%p615_p7)
}
 0x24e   : > { %s619_s30 = scalar_lea.hbm %s894_s11, 512  ;;  %s623_s8 = scalar_lea.hbm %s943_s3, 1024 }
 0x24f   : > { %p620_p9 = scmp.ne.s32.totalorder %s894_s11, %s619_s30  ;;  %p624_p5 = scmp.lt.u32.totalorder %s894_s11, %s943_s3 }
 0x250   : > { %p625_p11 = scmp.lt.u32.totalorder %s623_s8, %s619_s30  ;;  %p627_p4 = scmp.lt.u32.totalorder %s619_s30, %s894_s11 }
 0x251   : > { %p621_p2 = pnand %p620_p9, %p799_p12 }
 0x252   : > { %p626_p1 = por %p625_p11, %p624_p5 }
 0x253   : > { %p622_p0 = pneg %p621_p2 }
 0x254   : > { %p628_p6 = por %p627_p4, %p626_p1 }
 0x256   : > { %p629_p8 = pnand %p628_p6, %p622_p0 }
 0x258   : > { %632 = shalt.err (!%p629_p8)
}
 0x259   : > { %s686_s20 = smov 128   ;;  %s687_s4 = smov 8  }
 0x25a   : > { %486 = dma.vmem_to_hbm [thread:$0]  (%p799_p12), %s888_s25, 512, %s894_s11, %s352_s27, %s686_s20, %s686_s20, %s687_s4  }
 0x25b PF: > { %s380_s26 = sand.u32 1, %s663_s12   ;;  %p958_p10 = scmp.ne.s32.totalorder %s948_s19, 0 }
 0x25c   : > { %p959_p13 = scmp.ge.s32.totalorder %s675_s15, 2  ;;  %s381_s5 = scalar_lea.sflag [#allocation4], %s380_s26 }
 0x25e   : > { %p497_p3 = pnand %p959_p13, %p958_p10 }
 0x260   : > { %658 = dma.done.wait (!%p497_p3), %s381_s5, 512  }
 0x261   : > { %660 = vsyncadd (!%p497_p3), %s381_s5, 4294966784  ;;  %p17_p7 = scmp.ge.s32.totalorder %s764_s24, 4   ;;  %s960_s12 = smov %s667_s13 }
 0x262   : > { %s961_s13 = smov %s671_s14  ;;  %s962_s14 = smov %s795_s17 }
 0x263   : > { %s963_s15 = smov %s764_s24  ;;  %19 = sbr.rel (!%p17_p7) target bundleno = 6 (0x6), region = 81 }
 0x26a   :  { %386 = vsyncpa [#allocation3], 1 }
 0x26b   :  { %388 = vsyncpa [#allocation3 + $0x1], 1 }
 0x26c   :  { %389 = vsyncpa [#allocation6], 1 }
 0x26d   :  { %390 = vsyncpa [#allocation4], 1 }
 0x26e   :  { %392 = vsyncpa [#allocation4 + $0x1], 1 }

</bundles_post_ra>
